<compile_context>
chip_gen: v5e
topology: v5e:2x2
jax: 0.10.0
libtpu: 0.0.40
codegen_flags: <defaults>
</compile_context>

<pallas_src>
import jax
import jax.numpy as jnp
from jax.experimental import pallas as pl
from jax.experimental.pallas import tpu as pltpu


def _round_up(x, m):
    return ((x + m - 1) // m) * m


def trans_nonlinear_kernel(b_ref, v_ref, a_ref, dx_ref, bt_ref, o_ref):
    # MXU: (tm, 128) @ (128, 128) diagonal tile of block_diag(A_modules),
    # f32 accumulation regardless of input dtype.
    acc = jnp.dot(v_ref[...], a_ref[...], preferred_element_type=jnp.float32)
    # VPU broadcast-FMA for dx @ B.T (contraction depth 2) fused with bias.
    dx = dx_ref[...].astype(jnp.float32)
    acc = acc + (dx[:, 0:1] * bt_ref[0:1, :]
                 + dx[:, 1:2] * bt_ref[1:2, :]
                 + b_ref[0])
    # ReLU on the VPU; lane-dense (tn = 128) store.
    o_ref[...] = jnp.maximum(acc, 0.0).astype(o_ref.dtype)


def _assemble_diag_tiles(A_modules, n_pad, tn):
    """Pack (G, bs, bs) block parameters into (n_tiles, tn, tn) diagonal tiles.

    tiles[t] is the (tn, tn) diagonal tile of block_diag(A_modules) covering
    rows/cols [t*tn, (t+1)*tn); blocks beyond the real N are zero.
    Runs once per parameter set (outside the kernel).
    """
    G, bs, _ = A_modules.shape
    g_pad = n_pad // bs
    gpt = tn // bs                        # blocks per tile (tn % bs == 0 asserted)
    n_tiles = n_pad // tn
    A_pad = jnp.zeros((g_pad, bs, bs), A_modules.dtype).at[:G].set(A_modules)
    Am = A_pad.reshape(n_tiles, gpt, bs, bs)
    eye = jnp.eye(gpt, dtype=A_modules.dtype)
    tiles = jnp.einsum("tpij,pq->tpiqj", Am, eye).reshape(n_tiles, tn, tn)
    return tiles


def prepare_trans_params(A_modules, B, b, *, compute_dtype=jnp.bfloat16):
    """Pack parameters ONCE (per parameter update), reuse across forward calls."""
    G, bs, _ = A_modules.shape
    N = G * bs
    assert B.shape == (N, 2), "B must be (num_neurons, 2)"
    assert 128 % bs == 0, "block_size must divide 128 (tile / lane constraint)"

    n_pad = _round_up(N, 128)
    tn = 128                              # minimal MXU RHS width; min A traffic
    assert tn % bs == 0

    a_tiles = _assemble_diag_tiles(A_modules.astype(jnp.float32), n_pad, tn)
    a_tiles = a_tiles.astype(compute_dtype)
    bt = jnp.zeros((2, n_pad), jnp.float32).at[:, :N].set(B.T.astype(jnp.float32))
    b_arr = jnp.asarray(b, jnp.float32).reshape((1,))
    return dict(a_tiles=a_tiles, bt=bt, b=b_arr,
                N=N, n_pad=n_pad, tn=tn, compute_dtype=compute_dtype)


def trans_nonlinear_apply(params, v, dx, *, out_dtype=jnp.float32):
    """Forward pass using pre-packed params.  v: (batch, N), dx: (batch, 2)."""
    batch, N = v.shape
    assert N == params["N"], "v width must equal num_neurons"
    n_pad, tn = params["n_pad"], params["tn"]
    cdt = params["compute_dtype"]

    # Big batch tiles keep per-grid-step work large now that tn is only 128.
    b_pad0 = _round_up(batch, 8)
    tm = min(512, b_pad0)
    b_pad = _round_up(batch, tm)

    # Skip pad/unpad copies entirely when shapes are already aligned.
    need_pad = (b_pad != batch) or (n_pad != N)
    if need_pad:
        v_p = jnp.zeros((b_pad, n_pad), v.dtype).at[:batch, :N].set(v)
        dx_p = jnp.zeros((b_pad, 2), dx.dtype).at[:batch].set(dx)
    else:
        v_p, dx_p = v, dx
    v_p = v_p.astype(cdt)
    dx_p = dx_p.astype(jnp.float32)

    # Grid: N-tile axis OUTER, batch-tile axis INNER -> the A diag tile's block
    # index is constant across the inner loop, so it is fetched once per N tile.
    grid = (n_pad // tn, b_pad // tm)

    in_itm = jnp.dtype(cdt).itemsize
    out_itm = jnp.dtype(out_dtype).itemsize
    cost = pl.CostEstimate(
        flops=2 * b_pad * n_pad * tn + 5 * b_pad * n_pad,
        transcendentals=0,
        bytes_accessed=(b_pad * n_pad * in_itm          # v
                        + n_pad * tn * in_itm            # A diag tiles (read once)
                        + b_pad * n_pad * out_itm        # output
                        + b_pad * 2 * 4 + 2 * n_pad * 4  # dx, B^T
                        ))

    out = pl.pallas_call(
        trans_nonlinear_kernel,
        out_shape=jax.ShapeDtypeStruct((b_pad, n_pad), out_dtype),
        grid=grid,
        in_specs=[
            pl.BlockSpec(memory_space=pltpu.MemorySpace.SMEM),              # b (1,)
            pl.BlockSpec((tm, tn), lambda j, i: (i, j)),                    # v tile
            pl.BlockSpec((pl.Squeezed(), tn, tn), lambda j, i: (j, 0, 0)),  # A tile
            pl.BlockSpec((tm, 2), lambda j, i: (i, 0)),                     # dx
            pl.BlockSpec((2, tn), lambda j, i: (0, j)),                     # B^T tile
        ],
        out_specs=pl.BlockSpec((tm, tn), lambda j, i: (i, j)),
        compiler_params=pltpu.CompilerParams(
            dimension_semantics=("parallel", "parallel")),
        cost_estimate=cost,
    )(params["b"], v_p, params["a_tiles"], dx_p, params["bt"])

    if need_pad:
        out = out[:batch, :N]
    return out


def trans_nonlinear(v, dx, A_modules, B, b, *,
                    compute_dtype=jnp.bfloat16, out_dtype=jnp.float32):
    """Convenience one-shot wrapper (packs params + applies)."""
    params = prepare_trans_params(A_modules, B, b, compute_dtype=compute_dtype)
    return trans_nonlinear_apply(params, v, dx, out_dtype=out_dtype)


def init_params(key, num_neurons, block_size):
    """Init matching torch.rand(...) * 0.002 - 0.001 distributions."""
    num_blocks = num_neurons // block_size
    k1, k2 = jax.random.split(key)
    A_modules = jax.random.uniform(
        k1, (num_blocks, block_size, block_size), jnp.float32) * 0.002 - 0.001
    B_modules = jax.random.uniform(
        k2, (num_neurons, 2), jnp.float32) * 0.002 - 0.001
    b = jnp.zeros((), jnp.float32)
    return A_modules, B_modules, b


def _reference(v, dx, A_modules, B, b):
    A_dense = jax.scipy.linalg.block_diag(
        *[A_modules[i] for i in range(A_modules.shape[0])]).astype(jnp.float32)
    return jnp.maximum(v @ A_dense + dx @ B.T + b, 0.0)


if __name__ == "__main__":
    key = jax.random.PRNGKey(0)
    kp, kv, kd, kp2, kv2, kd2 = jax.random.split(key, 6)

    # --- Config 1: num_neurons=32, block_size=8, batch=8 (padded-N path, f32) ---
    A1, B1, _ = init_params(kp, num_neurons=32, block_size=8)
    b1 = jnp.float32(3e-4)               # non-zero so the fused bias is exercised
    v1 = jax.random.normal(kv, (8, 32), jnp.float32)
    dx1 = jax.random.normal(kd, (8, 2), jnp.float32)

    out1 = jax.block_until_ready(
        trans_nonlinear(v1, dx1, A1, B1, b1, compute_dtype=jnp.float32))
    ref1 = _reference(v1, dx1, A1, B1, b1)
    assert out1.shape == (8, 32)
    assert jnp.allclose(out1, ref1, atol=1e-5, rtol=1e-5), "f32 mismatch vs reference"

    # --- Config 2: num_neurons=128, block_size=8, batch=16 (aligned / no-pad path,
    #     default bf16 inputs, cached params reused across calls) ---
    A2, B2, _ = init_params(kp2, num_neurons=128, block_size=8)
    b2 = jnp.float32(3e-4)
    v2 = jax.random.normal(kv2, (16, 128), jnp.float32)
    dx2 = jax.random.normal(kd2, (16, 2), jnp.float32)

    params2 = prepare_trans_params(A2, B2, b2)          # packed once, bf16 inputs
    out2 = jax.block_until_ready(trans_nonlinear_apply(params2, v2, dx2))
    ref2 = _reference(v2, dx2, A2, B2, b2)
    assert out2.shape == (16, 128)
    assert jnp.allclose(out2, ref2, atol=1e-4), "bf16 mismatch vs reference"

    print("KERNEL_OK")
</pallas_src>

<mosaic_0001>
module attributes {stable_mosaic.version = 11 : i64} {
  func.func @trans_nonlinear_kernel(%arg0: i32, %arg1: i32, %arg2: memref<1xf32, #tpu.memory_space<smem>>, %arg3: memref<8x128xf32, #tpu.memory_space<vmem>>, %arg4: memref<1x128x128xf32, #tpu.memory_space<vmem>>, %arg5: memref<8x2xf32, #tpu.memory_space<vmem>>, %arg6: memref<2x128xf32, #tpu.memory_space<vmem>>, %arg7: memref<8x128xf32, #tpu.memory_space<vmem>>) attributes {dimension_semantics = [#tpu.dimension_semantics<parallel>, #tpu.dimension_semantics<parallel>], iteration_bounds = array<i64: 1, 1>, scalar_prefetch = 0 : i64, scratch_operands = 0 : i64, tpu.core_type = #tpu.core_type<tc>, window_params = [{transform_indices = @transform_0, window_bounds = array<i64: 1>}, {transform_indices = @transform_1, window_bounds = array<i64: 8, 128>}, {transform_indices = @transform_2, window_bounds = array<i64: 1, 128, 128>}, {transform_indices = @transform_3, window_bounds = array<i64: 8, 2>}, {transform_indices = @transform_4, window_bounds = array<i64: 2, 128>}, {transform_indices = @transform_5, window_bounds = array<i64: 8, 128>}]} {
    %c0 = arith.constant 0 : index
    %c0_0 = arith.constant 0 : index
    %0 = vector.load %arg3[%c0, %c0_0] : memref<8x128xf32, #tpu.memory_space<vmem>>, vector<8x128xf32>
    %c0_1 = arith.constant 0 : index
    %c0_2 = arith.constant 0 : index
    %c0_3 = arith.constant 0 : index
    %1 = vector.load %arg4[%c0_1, %c0_2, %c0_3] : memref<1x128x128xf32, #tpu.memory_space<vmem>>, vector<1x128x128xf32>
    %2 = vector.shape_cast %1 : vector<1x128x128xf32> to vector<128x128xf32>
    %cst = arith.constant dense<0.000000e+00> : vector<8x128xf32>
    %3 = tpu.matmul %0, %2, %cst {dimension_numbers = #tpu.dot_dimension_numbers<[1], [0], [0], [1], [0, 0, 1, 1], [], []>} : vector<8x128xf32>, vector<128x128xf32>, vector<8x128xf32> -> vector<8x128xf32>
    %c0_4 = arith.constant 0 : index
    %c0_5 = arith.constant 0 : index
    %4 = vector.load %arg5[%c0_4, %c0_5] : memref<8x2xf32, #tpu.memory_space<vmem>>, vector<8x2xf32>
    %5 = vector.extract_strided_slice %4 {offsets = [0, 0], sizes = [8, 1], strides = [1, 1]} : vector<8x2xf32> to vector<8x1xf32>
    %c0_6 = arith.constant 0 : index
    %c0_7 = arith.constant 0 : index
    %6 = vector.load %arg6[%c0_6, %c0_7] : memref<2x128xf32, #tpu.memory_space<vmem>>, vector<1x128xf32>
    %7 = vector.broadcast %5 : vector<8x1xf32> to vector<8x128xf32>
    %8 = vector.broadcast %6 : vector<1x128xf32> to vector<8x128xf32>
    %9 = arith.mulf %7, %8 : vector<8x128xf32>
    %10 = vector.extract_strided_slice %4 {offsets = [0, 1], sizes = [8, 1], strides = [1, 1]} : vector<8x2xf32> to vector<8x1xf32>
    %c1 = arith.constant 1 : index
    %c0_8 = arith.constant 0 : index
    %11 = vector.load %arg6[%c1, %c0_8] : memref<2x128xf32, #tpu.memory_space<vmem>>, vector<1x128xf32>
    %12 = vector.broadcast %10 : vector<8x1xf32> to vector<8x128xf32>
    %13 = vector.broadcast %11 : vector<1x128xf32> to vector<8x128xf32>
    %14 = arith.mulf %12, %13 : vector<8x128xf32>
    %15 = arith.addf %9, %14 : vector<8x128xf32>
    %c0_9 = arith.constant 0 : index
    %16 = memref.load %arg2[%c0_9] : memref<1xf32, #tpu.memory_space<smem>>
    %17 = vector.broadcast %16 : f32 to vector<8x128xf32>
    %18 = arith.addf %15, %17 : vector<8x128xf32>
    %19 = arith.addf %3, %18 : vector<8x128xf32>
    %cst_10 = arith.constant 0.000000e+00 : f32
    %20 = vector.broadcast %cst_10 : f32 to vector<8x128xf32>
    %21 = arith.maximumf %19, %20 : vector<8x128xf32>
    %c0_11 = arith.constant 0 : index
    %c0_12 = arith.constant 0 : index
    %22 = vector.load %arg7[%c0_11, %c0_12] : memref<8x128xf32, #tpu.memory_space<vmem>>, vector<8x128xf32>
    tpu.vector_store %arg7[%c0_11, %c0_12], %21 {strides = array<i32>} : memref<8x128xf32, #tpu.memory_space<vmem>>, vector<8x128xf32>,
    return
  }
  func.func @transform_0(%arg0: i32, %arg1: i32) -> i32 {
    %c0_i32 = arith.constant 0 : i32
    %c0_i32_0 = arith.constant 0 : i32
    return %c0_i32 : i32
  }
  func.func @transform_1(%arg0: i32, %arg1: i32) -> (i32, i32) {
    %c0_i32 = arith.constant 0 : i32
    return %arg1, %arg0 : i32, i32
  }
  func.func @transform_2(%arg0: i32, %arg1: i32) -> (i32, i32, i32) {
    %c0_i32 = arith.constant 0 : i32
    %c0_i32_0 = arith.constant 0 : i32
    %c0_i32_1 = arith.constant 0 : i32
    return %arg0, %c0_i32, %c0_i32_0 : i32, i32, i32
  }
  func.func @transform_3(%arg0: i32, %arg1: i32) -> (i32, i32) {
    %c0_i32 = arith.constant 0 : i32
    %c0_i32_0 = arith.constant 0 : i32
    return %arg1, %c0_i32 : i32, i32
  }
  func.func @transform_4(%arg0: i32, %arg1: i32) -> (i32, i32) {
    %c0_i32 = arith.constant 0 : i32
    %c0_i32_0 = arith.constant 0 : i32
    return %c0_i32, %arg0 : i32, i32
  }
  func.func @transform_5(%arg0: i32, %arg1: i32) -> (i32, i32) {
    %c0_i32 = arith.constant 0 : i32
    return %arg1, %arg0 : i32, i32
  }
}

</mosaic_0001>

<bundles_post_ra>
// kernel: tpu_custom_call.1
= control target key start
LH: loop header
LB: loop body
LE: loop exit
PB: predicated region body
PF: predicated region fallthrough
CT: control target
= control target key end

     0   :  { %11 = vsyncpa [#allocation4], 0  ;;  %s233_s0 = inlined_call_operand.<no memory space> [shape: f32[1], index: 0, kind: input, shape index: {}]   ;;  %s234_s1 = inlined_call_operand.vmem [shape: f32[8,128], index: 1, kind: input, shape index: {}]   ;;  %s235_s2 = inlined_call_operand.hbm [shape: f32[1,128,128], index: 2, kind: input, shape index: {}]   ;;  %s236_s3 = inlined_call_operand.vmem [shape: f32[8,2], index: 3, kind: input, shape index: {}]   ;;  %s237_s4 = inlined_call_operand.vmem [shape: f32[2,128], index: 4, kind: input, shape index: {}]   ;;  %s238_s5 = inlined_call_operand.hbm [shape: f32[8,128], index: 5, kind: output, shape index: {}]  }
   0x1   :  { %12 = vsyncpa [#allocation5], 0  ;;  %s21_s20 = sshll.u32 %s235_s2, 4  ;;  %s176_s21 = smov [#allocation3]   ;;  %s22_s20 = int_to_ptr.hbm [resolvable:$true] %s21_s20 }
   0x2   :  { %s23_s22 = sshll.u32 %s176_s21, 4  ;;  %s177_s23 = smov 128   ;;  %s24_s22 = int_to_ptr.vmem [resolvable:$true] %s23_s22 }
   0x3   :  { %s178_s24 = smov 8  }
   0x4   :  { %29 = dma.hbm_to_vmem [thread:$0]  %s22_s20, 2048, %s24_s22, [#allocation4], %s177_s23, %s177_s23, %s178_s24  }
   0x5   :  { %172 = dma.done.wait [#allocation4], 2048  }
   0x6   :  { %173 = vsyncadd [#allocation4], 4294965248  ;;  %v179_v0 = vmov 0   ;;  %v54_v1 = vld [vmem:[#allocation3 + $0x78] sm:$0xff]  ;;  %v53_v2 = vld [vmem:[#allocation3 + $0x70] sm:$0xff]  ;;  %v180_v10 = vmov 1   ;;  %v73_v27 = vstv %s233_s0 }
   0x7   :  { %120 = vset.pattern.permute.xlu0 %v179_v0  ;;  %75 = vmatpush.msra.mxu0 %v54_v1  ;;  %v52_v3 = vld [vmem:[#allocation3 + $0x68] sm:$0xff]  ;;  %v55_v4 = vld [vmem:[%s236_s3] sm:$0xff]  ;;  %v50_v6 = vld [vmem:[#allocation3 + $0x58] sm:$0xff]  ;;  %s104_s11 = sshll.u32 %s238_s5, 4  ;;  %s105_s11 = int_to_ptr.hbm [resolvable:$true] %s104_s11 }
   0x8   :  { %v51_v5 = vld [vmem:[#allocation3 + $0x60] sm:$0xff]  ;;  %59 = vperm.xlu0 %120, %v55_v4   ;;  %v49_v7 = vld [vmem:[#allocation3 + $0x50] sm:$0xff]  ;;  %v48_v8 = vld [vmem:[#allocation3 + $0x48] sm:$0xff] }
   0x9   :  { %76 = vmatpush.msra.mxu0 %v53_v2  ;;  %v47_v9 = vld [vmem:[#allocation3 + $0x40] sm:$0xff]  ;;  %v46_v11 = vld [vmem:[#allocation3 + $0x38] sm:$0xff]  ;;  %v45_v12 = vld [vmem:[#allocation3 + $0x30] sm:$0xff] }
   0xa   :  { %v44_v13 = vld [vmem:[#allocation3 + $0x28] sm:$0xff]  ;;  %v43_v14 = vld [vmem:[#allocation3 + $0x20] sm:$0xff]  ;;  %v42_v15 = vld [vmem:[#allocation3 + $0x18] sm:$0xff] }
   0xb   :  { %77 = vmatpush.msra.mxu0 %v52_v3  ;;  %v41_v16 = vld [vmem:[#allocation3 + $0x10] sm:$0xff]  ;;  %v40_v17 = vld [vmem:[#allocation3 + $0x8] sm:$0xff]  ;;  %v39_v18 = vld [vmem:[#allocation3] sm:$0xff] }
   0xc   :  { %v38_v19 = vld [vmem:[%s234_s1] sm:$0xff]  ;;  %s181_s1 = smov [#allocation6]  }
   0xd   :  { %78 = vmatpush.msra.mxu0 %v51_v5  ;;  %v122_v21 = vld [vmem:[%s237_s4] ss:$0 sm:$0xff]  ;;  %v123_v22 = vld [vmem:[%s237_s4 + $0x1] ss:$0 sm:$0xff]  ;;  %s102_s8 = sshll.u32 %s181_s1, 4  ;;  %s103_s8 = int_to_ptr.vmem [resolvable:$true] %s102_s8 }
   0xf   :  { %79 = vmatpush.msra.mxu0 %v50_v6 }
  0x10   :  { %121 = vset.pattern.permute.xlu0 %v180_v10 }
  0x11   :  { %80 = vmatpush.msra.mxu0 %v49_v7  ;;  %66 = vperm.xlu0 %121, %v55_v4  }
  0x13   :  { %81 = vmatpush.msra.mxu0 %v48_v8 }
  0x15   :  { %82 = vmatpush.msra.mxu0 %v47_v9 }
  0x17   :  { %83 = vmatpush.msra.mxu0 %v46_v11 }
  0x19   :  { %84 = vmatpush.msra.mxu0 %v45_v12 }
  0x1b   :  { %85 = vmatpush.msra.mxu0 %v44_v13 }
  0x1d   :  { %86 = vmatpush.msra.mxu0 %v43_v14 }
  0x1f   :  { %87 = vmatpush.msra.mxu0 %v42_v15 }
  0x21   :  { %88 = vmatpush.msra.mxu0 %v41_v16 }
  0x23   :  { %89 = vmatpush.msra.mxu0 %v40_v17 }
  0x25   :  { %90 = vmatpush.msra.mxu0 %v39_v18 }
  0x26   :  { %91 = vmatmul.f32.vlgmr.msra.gmra.mxu0 %v38_v19 }
  0x7a   :  { %v60_v20 = vpop.permute.xlu0 %59 }
  0x7b   :  { %v63_v24 = vmul.f32 %v122_v21, %v60_v20 }
  0x83   :  { %v67_v23 = vpop.permute.xlu0 %66 }
  0x84   :  { %v70_v25 = vmul.f32 %v123_v22, %v67_v23 }
  0x86   :  { %v71_v26 = vadd.f32 %v70_v25, %v63_v24 }
  0x88   :  { %v74_v28 = vadd.f32 %v73_v27, %v71_v26 }
  0xa3   :  { %v92_v29 = vpop.f32.mrf.mxu0 }
  0xa4   :  { %v93_v30 = vadd.f32 %v92_v29, %v74_v28 }
  0xa6   :  { %v95_v31 = vmax.f32 %v93_v30, 0.0 }
  0xa8   :  { %96 = vst [vmem:[#allocation6] sm:$0xff] %v95_v31 }
  0xa9   :  { %107 = dma.vmem_to_hbm [thread:$0]  %s103_s8, 128, %s105_s11, [#allocation5]  }
  0xaa   :  { %174 = dma.done.wait [#allocation5], 128  }
  0xab   :  { %175 = vsyncadd [#allocation5], 4294967168 }
  0xac   :  { %112 = vsyncpa [#allocation4], 1 }
  0xad   :  { %113 = vsyncpa [#allocation5], 1 }

</bundles_post_ra>
